<compile_context>
chip_gen: v7x
topology: tpu7x:2x2x1
jax: 0.10.0
libtpu: 0.0.40
codegen_flags: <defaults>
</compile_context>

<pallas_src>
import functools

import jax
import jax.numpy as jnp
from jax.experimental import pallas as pl
from jax.experimental.pallas import tpu as pltpu

_LANE = 1024       # lane-dense last dim (multiple of 128)
_TILE_ROWS = 512   # rows per tile (multiple of 8)


def _identity_kernel(x_ref, o_ref):
    # Straight VMEM copy (elementwise identity).
    o_ref[...] = x_ref[...]


@functools.partial(jax.jit, static_argnames=())
def block0_forward(x):
    """Identity forward pass of Block0 through a Pallas TPU kernel."""
    orig_shape = x.shape
    n = x.size
    if n == 0:
        return x

    # Flatten to a lane-dense 2D slab (rows, 1024); pad the tail only if n
    # isn't a multiple of the lane width (pure layout plumbing in the wrapper).
    rows = -(-n // _LANE)
    pad = rows * _LANE - n
    flat = x.reshape(-1)
    if pad:
        flat = jnp.pad(flat, (0, pad))
    x2d = flat.reshape(rows, _LANE)

    # Full-extent block if the array is small, otherwise a fixed 512-row tile
    # (multiple of 8 sublanes). Trailing partial blocks are handled by Pallas.
    tile_rows = rows if rows < _TILE_ROWS else _TILE_ROWS
    grid = (pl.cdiv(rows, tile_rows),)

    out = pl.pallas_call(
        _identity_kernel,
        out_shape=jax.ShapeDtypeStruct((rows, _LANE), x.dtype),
        grid=grid,
        in_specs=[pl.BlockSpec((tile_rows, _LANE), lambda i: (i, 0))],
        out_specs=pl.BlockSpec((tile_rows, _LANE), lambda i: (i, 0)),
        input_output_aliases={0: 0},
        compiler_params=pltpu.CompilerParams(
            dimension_semantics=("parallel",),
        ),
    )(x2d)

    flat_out = out.reshape(-1)
    if pad:
        flat_out = flat_out[:n]
    return flat_out.reshape(orig_shape)


if __name__ == "__main__":
    key = jax.random.PRNGKey(0)
    # Small NCHW-style input consistent with a generic block module.
    x = jax.random.normal(key, (2, 4, 16, 16), dtype=jnp.float32)

    y = block0_forward(x)
    jax.block_until_ready(y)

    assert y.shape == x.shape
    assert y.dtype == x.dtype
    assert bool(jnp.all(y == x))

    print("KERNEL_OK")
</pallas_src>

<mosaic_0001>
module attributes {stable_mosaic.version = 11 : i64} {
  func.func @_identity_kernel(%arg0: i32, %arg1: memref<2x1024xf32, #tpu.memory_space<vmem>>, %arg2: memref<2x1024xf32, #tpu.memory_space<vmem>>) attributes {dimension_semantics = [#tpu.dimension_semantics<parallel>], iteration_bounds = array<i64: 1>, scalar_prefetch = 0 : i64, scratch_operands = 0 : i64, tpu.core_type = #tpu.core_type<tc>, window_params = [{transform_indices = @transform_0, window_bounds = array<i64: 2, 1024>}, {transform_indices = @transform_1, window_bounds = array<i64: 2, 1024>}]} {
    %c0 = arith.constant 0 : index
    %c0_0 = arith.constant 0 : index
    %0 = vector.load %arg1[%c0, %c0_0] : memref<2x1024xf32, #tpu.memory_space<vmem>>, vector<2x1024xf32>
    %c0_1 = arith.constant 0 : index
    %c0_2 = arith.constant 0 : index
    %1 = vector.load %arg2[%c0_1, %c0_2] : memref<2x1024xf32, #tpu.memory_space<vmem>>, vector<2x1024xf32>
    tpu.vector_store %arg2[%c0_1, %c0_2], %0 {strides = array<i32>} : memref<2x1024xf32, #tpu.memory_space<vmem>>, vector<2x1024xf32>,
    return
  }
  func.func @transform_0(%arg0: i32) -> (i32, i32) {
    %c0_i32 = arith.constant 0 : i32
    %c0_i32_0 = arith.constant 0 : i32
    return %arg0, %c0_i32 : i32, i32
  }
  func.func @transform_1(%arg0: i32) -> (i32, i32) {
    %c0_i32 = arith.constant 0 : i32
    %c0_i32_0 = arith.constant 0 : i32
    return %arg0, %c0_i32 : i32, i32
  }
}

</mosaic_0001>

<bundles_post_ra>
// kernel: block0_forward.1
= control target key start
LH: loop header
LB: loop body
LE: loop exit
PB: predicated region body
PF: predicated region fallthrough
CT: control target
= control target key end

     0   :  { %s38_s0 = inlined_call_operand.vmem [shape: f32[2,1024], index: 0, kind: input, shape index: {}, may-alias: {0,1}]   ;;  %s39_s1 = inlined_call_operand.vmem [shape: f32[2,1024], index: 1, kind: output, shape index: {}, may-alias: {0,1}]  }
   0x1   :  { %v8_v0 = vld [vmem:[%s38_s0] sm:$0xff]  ;;  %v9_v1 = vld [vmem:[%s38_s0 + $0x8] sm:$0xff] }
   0x2   :  { %10 = vst [vmem:[%s39_s1] sm:$0xff] %v8_v0  ;;  %11 = vst [vmem:[%s39_s1 + $0x8] sm:$0xff] %v9_v1 }

</bundles_post_ra>
